<compile_context>
chip_gen: v7x
topology: tpu7x:2x2x1
jax: 0.10.0
libtpu: 0.0.40
codegen_flags: <defaults>
</compile_context>

<pallas_src>
import functools

import jax
import jax.numpy as jnp
from jax.experimental import pallas as pl
from jax.experimental.pallas import tpu as pltpu


def _affine_kernel(theta_ref, coord_ref, img_ref, out_ref, *,
                   H, W, C, B_TILE, TILE_P):
    """theta_ref: (B*6,) f32 SMEM; coord_ref: (2, TILE_P) f32 VMEM;
    img_ref: (B_TILE*C*H, W) f32 VMEM; out_ref: (B_TILE*C, TILE_P) f32 VMEM."""
    bt = pl.program_id(0)
    f32 = jnp.float32

    ox = coord_ref[0:1, :]          # (1, TILE_P) pixel-centered dest x coords
    oy = coord_ref[1:2, :]          # (1, TILE_P) pixel-centered dest y coords

    # Source-column / source-row iotas, shared by all images of this tile.
    wi = jax.lax.broadcasted_iota(jnp.int32, (W, TILE_P), 0).astype(f32)
    hi = jax.lax.broadcasted_iota(jnp.int32, (H, TILE_P), 0).astype(f32)

    # Grid normalization (/0.5W) and grid_sample unnormalization (*0.5W) cancel
    # except for these constants (folded once here, not per pixel).
    cx = 0.5 * W - 0.5
    cy = 0.5 * H - 0.5

    for b_local in range(B_TILE):                     # small static unroll
        tb = (bt * B_TILE + b_local) * 6
        t00 = theta_ref[tb + 0]
        t01 = theta_ref[tb + 1]
        t02 = theta_ref[tb + 2]
        t10 = theta_ref[tb + 3]
        t11 = theta_ref[tb + 4]
        t12 = theta_ref[tb + 5]

        # Source sample position in pixel space (align_corners=False).
        ix = t00 * ox + t01 * oy + (t02 + cx)         # (1, TILE_P)
        iy = t10 * ox + t11 * oy + (t12 + cy)
        x0 = jnp.floor(ix)
        y0 = jnp.floor(iy)
        fx = ix - x0
        fy = iy - y0

        # Separable bilinear: x-one-hot fused with x-weights, y-one-hot fused
        # with y-weights.  OOB corner indices match no iota row -> weight 0,
        # i.e. padding_mode='zeros' for free.
        Xw = (jnp.where(wi == x0, 1.0 - fx, 0.0)
              + jnp.where(wi == x0 + 1.0, fx, 0.0))   # (W, TILE_P)
        Yw = (jnp.where(hi == y0, 1.0 - fy, 0.0)
              + jnp.where(hi == y0 + 1.0, fy, 0.0))   # (H, TILE_P)

        # x-gather + x-weighting as one MXU matmul per image (M = C*H).
        # (kept f32 for exact parity with the reference numerics)
        img_b = img_ref[b_local * C * H:(b_local + 1) * C * H, :]   # (C*H, W)
        G = jnp.dot(img_b, Xw, preferred_element_type=f32)          # (C*H, TILE_P)

        # y-selection + y-weighting: elementwise multiply, reduce over H.
        res = jnp.sum(G.reshape(C, H, TILE_P) * Yw[None, :, :], axis=1)  # (C, TILE_P)

        # Direct lane-dense store; ends this image's live ranges here.
        out_ref[b_local * C:(b_local + 1) * C, :] = res.astype(out_ref.dtype)


def _pick_b_tile(B, C):
    # Smallest batch tile whose output rows (B_TILE*C) fill whole 8-sublane
    # groups; fallback B_TILE = B (block == full extent is always legal).
    for d in range(1, B + 1):
        if B % d == 0 and (d * C) % 8 == 0:
            return d
    return B


def _vmem_capacity_bytes():
    try:
        info = pltpu.get_tpu_info()
        cap = getattr(info, "vmem_capacity_bytes", None)
        if cap:
            return int(cap)
    except Exception:
        pass
    return 64 << 20   # conservative default (v7x physical per-TC VMEM)


def affine_transforms_forward(imgs, xform_params):
    """imgs: (B, C, H, W); xform_params: (B, 2, 3). Returns (B, C, H, W) f32."""
    B, C, H, W = imgs.shape
    HW = H * W
    f32 = jnp.float32

    vmem_cap = _vmem_capacity_bytes()

    B_TILE = _pick_b_tile(B, C)

    # Generation-aware lane-dense destination-pixel tile; pad HW up to a
    # multiple of TILE_P (never fall back to TILE_P = HW).
    pref_tile = 512 if vmem_cap > (64 << 20) else 256
    if HW >= pref_tile:
        TILE_P = pref_tile
    elif HW >= 256:
        TILE_P = 256
    else:
        TILE_P = 128
    HW_pad = ((HW + TILE_P - 1) // TILE_P) * TILE_P

    # Images laid out as (B*C*H, W) rows: the x-gather matmul contracts over W.
    imgs_rows = imgs.reshape(B * C * H, W).astype(f32)
    theta_flat = xform_params.reshape(B * 6).astype(f32)   # 1-D SMEM, no padding

    # Pixel-centered destination base-grid coords (torchvision _gen_affine_grid),
    # merged into one (2, HW_pad) array; padded tail is cropped after the call.
    p = jnp.arange(HW, dtype=jnp.int32)
    ox = (p % W).astype(f32) - 0.5 * W + 0.5
    oy = (p // W).astype(f32) - 0.5 * H + 0.5
    coords = jnp.stack([ox, oy], axis=0)
    if HW_pad > HW:
        coords = jnp.pad(coords, ((0, 0), (0, HW_pad - HW)))

    grid = (B // B_TILE, HW_pad // TILE_P)

    # VMEM budget: double-buffered blocks + bounded in-kernel temporaries,
    # capped against the actual generation's capacity (64 MiB v7x, 128 MiB
    # v5e/v6e) rather than a fixed 32 MiB clamp.
    est = (2 * B_TILE * C * H * W * 4            # image block, double-buffered
           + 2 * B_TILE * C * TILE_P * 4         # out block, double-buffered
           + 2 * 2 * TILE_P * 4                  # coords tile, double-buffered
           + (C * H + 2 * W + 2 * H + 16) * TILE_P * 4)   # G / Xw / Yw / iotas
    vmem_limit = int(min(max(2 * est, 16 << 20), (vmem_cap * 3) // 4))

    kernel = functools.partial(_affine_kernel, H=H, W=W, C=C,
                               B_TILE=B_TILE, TILE_P=TILE_P)
    out_flat = pl.pallas_call(
        kernel,
        out_shape=jax.ShapeDtypeStruct((B * C, HW_pad), f32),
        grid=grid,
        in_specs=[
            pl.BlockSpec(memory_space=pltpu.MemorySpace.SMEM),           # theta (whole)
            pl.BlockSpec((2, TILE_P), lambda bt, pt: (0, pt)),           # coords tile
            pl.BlockSpec((B_TILE * C * H, W), lambda bt, pt: (bt, 0)),   # resident images
        ],
        out_specs=pl.BlockSpec((B_TILE * C, TILE_P), lambda bt, pt: (bt, pt)),
        compiler_params=pltpu.CompilerParams(
            dimension_semantics=("parallel", "parallel"),
            vmem_limit_bytes=vmem_limit,
        ),
    )(theta_flat, coords, imgs_rows)

    # TODO(synk): for very large images, a PrefetchScalarGridSpec variant that
    # DMAs only the source-row band touched by each destination tile would cut
    # HBM traffic further; not needed for correctness.
    return out_flat[:, :HW].reshape(B, C, H, W)


def affine_reference(imgs, theta):
    """Pure-JAX reference of the same forward semantics (for verification)."""
    B, C, H, W = imgs.shape
    xg = jnp.arange(W, dtype=jnp.float32) - 0.5 * W + 0.5
    yg = jnp.arange(H, dtype=jnp.float32) - 0.5 * H + 0.5
    xx, yy = jnp.meshgrid(xg, yg)  # (H, W)
    outs = []
    for b in range(B):
        t = theta[b]
        gx = (t[0, 0] * xx + t[0, 1] * yy + t[0, 2]) / (0.5 * W)
        gy = (t[1, 0] * xx + t[1, 1] * yy + t[1, 2]) / (0.5 * H)
        ix = ((gx + 1.0) * W - 1.0) * 0.5
        iy = ((gy + 1.0) * H - 1.0) * 0.5
        x0 = jnp.floor(ix).astype(jnp.int32)
        y0 = jnp.floor(iy).astype(jnp.int32)
        fx = ix - x0
        fy = iy - y0
        res = jnp.zeros((C, H, W), jnp.float32)
        for dy in (0, 1):
            for dx in (0, 1):
                xi = x0 + dx
                yi = y0 + dy
                w = (fx if dx else 1.0 - fx) * (fy if dy else 1.0 - fy)
                inb = (xi >= 0) & (xi < W) & (yi >= 0) & (yi < H)
                w = jnp.where(inb, w, 0.0)
                xic = jnp.clip(xi, 0, W - 1)
                yic = jnp.clip(yi, 0, H - 1)
                vals = imgs[b][:, yic, xic]  # (C, H, W)
                res = res + w[None] * vals
        outs.append(res)
    return jnp.stack(outs)


if __name__ == "__main__":
    key = jax.random.PRNGKey(0)
    B, C, H, W = 2, 4, 16, 16
    imgs = jax.random.uniform(key, (B, C, H, W), dtype=jnp.float32)

    # Parameter init per module __init__: eye(2, 3) repeated over the batch.
    eye23 = jnp.array([[1.0, 0.0, 0.0], [0.0, 1.0, 0.0]], dtype=jnp.float32)
    xform_params = jnp.tile(eye23[None], (B, 1, 1))

    # Identity params -> output must reproduce the input.
    out = affine_transforms_forward(imgs, xform_params)
    jax.block_until_ready(out)
    assert out.shape == (B, C, H, W)
    assert jnp.allclose(out, imgs, atol=1e-5)

    # Perturbed params (as after a few attack steps) vs pure-JAX reference.
    delta = jnp.array(
        [[[0.015, -0.010, 0.025], [0.005, 0.020, -0.015]],
         [[-0.010, 0.005, -0.020], [0.0125, -0.0075, 0.010]]],
        dtype=jnp.float32,
    )
    params2 = xform_params + delta
    out2 = affine_transforms_forward(imgs, params2)
    ref2 = affine_reference(imgs, params2)
    jax.block_until_ready(out2)
    assert jnp.allclose(out2, ref2, atol=1e-4, rtol=1e-4)

    # TODO(synk): update_and_project_params (sign-SGD step on theta) is an
    # optimizer-side op, not part of forward; not implemented as a kernel.
    print("KERNEL_OK")
</pallas_src>

<mosaic_0001>
module attributes {stable_mosaic.version = 11 : i64} {
  func.func @_affine_kernel(%arg0: i32, %arg1: i32, %arg2: memref<12xf32, #tpu.memory_space<smem>>, %arg3: memref<2x256xf32, #tpu.memory_space<vmem>>, %arg4: memref<128x16xf32, #tpu.memory_space<vmem>>, %arg5: memref<8x256xf32, #tpu.memory_space<vmem>>) attributes {dimension_semantics = [#tpu.dimension_semantics<parallel>, #tpu.dimension_semantics<parallel>], iteration_bounds = array<i64: 1, 1>, scalar_prefetch = 0 : i64, scratch_operands = 0 : i64, tpu.core_type = #tpu.core_type<tc>, window_params = [{transform_indices = @transform_0, window_bounds = array<i64: 12>}, {transform_indices = @transform_1, window_bounds = array<i64: 2, 256>}, {transform_indices = @transform_2, window_bounds = array<i64: 128, 16>}, {transform_indices = @transform_3, window_bounds = array<i64: 8, 256>}]} {
    %c0 = arith.constant 0 : index
    %c0_0 = arith.constant 0 : index
    %0 = vector.load %arg3[%c0, %c0_0] : memref<2x256xf32, #tpu.memory_space<vmem>>, vector<1x256xf32>
    %c1 = arith.constant 1 : index
    %c0_1 = arith.constant 0 : index
    %1 = vector.load %arg3[%c1, %c0_1] : memref<2x256xf32, #tpu.memory_space<vmem>>, vector<1x256xf32>
    %2 = tpu.iota {dimensions = array<i32: 0>} : vector<16x256xi32>
    %3 = arith.sitofp %2 : vector<16x256xi32> to vector<16x256xf32>
    %4 = tpu.iota {dimensions = array<i32: 0>} : vector<16x256xi32>
    %5 = arith.sitofp %4 : vector<16x256xi32> to vector<16x256xf32>
    %c2_i32 = arith.constant 2 : i32
    %6 = arith.muli %arg0, %c2_i32 : i32
    %c0_i32 = arith.constant 0 : i32
    %7 = arith.addi %6, %c0_i32 : i32
    %c6_i32 = arith.constant 6 : i32
    %8 = arith.muli %7, %c6_i32 : i32
    %c0_i32_2 = arith.constant 0 : i32
    %9 = arith.addi %8, %c0_i32_2 : i32
    %10 = arith.index_cast %9 : i32 to index
    %11 = memref.load %arg2[%10] : memref<12xf32, #tpu.memory_space<smem>>
    %c1_i32 = arith.constant 1 : i32
    %12 = arith.addi %8, %c1_i32 : i32
    %13 = arith.index_cast %12 : i32 to index
    %14 = memref.load %arg2[%13] : memref<12xf32, #tpu.memory_space<smem>>
    %c2_i32_3 = arith.constant 2 : i32
    %15 = arith.addi %8, %c2_i32_3 : i32
    %16 = arith.index_cast %15 : i32 to index
    %17 = memref.load %arg2[%16] : memref<12xf32, #tpu.memory_space<smem>>
    %c3_i32 = arith.constant 3 : i32
    %18 = arith.addi %8, %c3_i32 : i32
    %19 = arith.index_cast %18 : i32 to index
    %20 = memref.load %arg2[%19] : memref<12xf32, #tpu.memory_space<smem>>
    %c4_i32 = arith.constant 4 : i32
    %21 = arith.addi %8, %c4_i32 : i32
    %22 = arith.index_cast %21 : i32 to index
    %23 = memref.load %arg2[%22] : memref<12xf32, #tpu.memory_space<smem>>
    %c5_i32 = arith.constant 5 : i32
    %24 = arith.addi %8, %c5_i32 : i32
    %25 = arith.index_cast %24 : i32 to index
    %26 = memref.load %arg2[%25] : memref<12xf32, #tpu.memory_space<smem>>
    %27 = vector.broadcast %11 : f32 to vector<1x256xf32>
    %28 = arith.mulf %27, %0 : vector<1x256xf32>
    %29 = vector.broadcast %14 : f32 to vector<1x256xf32>
    %30 = arith.mulf %29, %1 : vector<1x256xf32>
    %31 = arith.addf %28, %30 : vector<1x256xf32>
    %cst = arith.constant 7.500000e+00 : f32
    %32 = arith.addf %17, %cst : f32
    %33 = vector.broadcast %32 : f32 to vector<1x256xf32>
    %34 = arith.addf %31, %33 : vector<1x256xf32>
    %35 = vector.broadcast %20 : f32 to vector<1x256xf32>
    %36 = arith.mulf %35, %0 : vector<1x256xf32>
    %37 = vector.broadcast %23 : f32 to vector<1x256xf32>
    %38 = arith.mulf %37, %1 : vector<1x256xf32>
    %39 = arith.addf %36, %38 : vector<1x256xf32>
    %cst_4 = arith.constant 7.500000e+00 : f32
    %40 = arith.addf %26, %cst_4 : f32
    %41 = vector.broadcast %40 : f32 to vector<1x256xf32>
    %42 = arith.addf %39, %41 : vector<1x256xf32>
    %43 = math.floor %34 : vector<1x256xf32>
    %44 = math.floor %42 : vector<1x256xf32>
    %45 = arith.subf %34, %43 : vector<1x256xf32>
    %46 = arith.subf %42, %44 : vector<1x256xf32>
    %47 = vector.broadcast %43 : vector<1x256xf32> to vector<16x256xf32>
    %48 = arith.cmpf oeq, %3, %47 : vector<16x256xf32>
    %cst_5 = arith.constant 1.000000e+00 : f32
    %49 = vector.broadcast %cst_5 : f32 to vector<1x256xf32>
    %50 = arith.subf %49, %45 : vector<1x256xf32>
    %cst_6 = arith.constant 0.000000e+00 : f32
    %51 = vector.shape_cast %50 : vector<1x256xf32> to vector<1x256xf32>
    %52 = vector.broadcast %51 : vector<1x256xf32> to vector<16x256xf32>
    %53 = vector.broadcast %cst_6 : f32 to vector<16x256xf32>
    %54 = arith.select %48, %52, %53 : vector<16x256xi1>, vector<16x256xf32>
    %cst_7 = arith.constant 1.000000e+00 : f32
    %55 = vector.broadcast %cst_7 : f32 to vector<1x256xf32>
    %56 = arith.addf %43, %55 : vector<1x256xf32>
    %57 = vector.broadcast %56 : vector<1x256xf32> to vector<16x256xf32>
    %58 = arith.cmpf oeq, %3, %57 : vector<16x256xf32>
    %cst_8 = arith.constant 0.000000e+00 : f32
    %59 = vector.shape_cast %45 : vector<1x256xf32> to vector<1x256xf32>
    %60 = vector.broadcast %59 : vector<1x256xf32> to vector<16x256xf32>
    %61 = vector.broadcast %cst_8 : f32 to vector<16x256xf32>
    %62 = arith.select %58, %60, %61 : vector<16x256xi1>, vector<16x256xf32>
    %63 = arith.addf %54, %62 : vector<16x256xf32>
    %64 = vector.broadcast %44 : vector<1x256xf32> to vector<16x256xf32>
    %65 = arith.cmpf oeq, %5, %64 : vector<16x256xf32>
    %cst_9 = arith.constant 1.000000e+00 : f32
    %66 = vector.broadcast %cst_9 : f32 to vector<1x256xf32>
    %67 = arith.subf %66, %46 : vector<1x256xf32>
    %cst_10 = arith.constant 0.000000e+00 : f32
    %68 = vector.shape_cast %67 : vector<1x256xf32> to vector<1x256xf32>
    %69 = vector.broadcast %68 : vector<1x256xf32> to vector<16x256xf32>
    %70 = vector.broadcast %cst_10 : f32 to vector<16x256xf32>
    %71 = arith.select %65, %69, %70 : vector<16x256xi1>, vector<16x256xf32>
    %cst_11 = arith.constant 1.000000e+00 : f32
    %72 = vector.broadcast %cst_11 : f32 to vector<1x256xf32>
    %73 = arith.addf %44, %72 : vector<1x256xf32>
    %74 = vector.broadcast %73 : vector<1x256xf32> to vector<16x256xf32>
    %75 = arith.cmpf oeq, %5, %74 : vector<16x256xf32>
    %cst_12 = arith.constant 0.000000e+00 : f32
    %76 = vector.shape_cast %46 : vector<1x256xf32> to vector<1x256xf32>
    %77 = vector.broadcast %76 : vector<1x256xf32> to vector<16x256xf32>
    %78 = vector.broadcast %cst_12 : f32 to vector<16x256xf32>
    %79 = arith.select %75, %77, %78 : vector<16x256xi1>, vector<16x256xf32>
    %80 = arith.addf %71, %79 : vector<16x256xf32>
    %c0_13 = arith.constant 0 : index
    %c0_14 = arith.constant 0 : index
    %81 = vector.load %arg4[%c0_13, %c0_14] : memref<128x16xf32, #tpu.memory_space<vmem>>, vector<64x16xf32>
    %cst_15 = arith.constant dense<0.000000e+00> : vector<64x256xf32>
    %82 = tpu.matmul %81, %63, %cst_15 {dimension_numbers = #tpu.dot_dimension_numbers<[1], [0], [0], [1], [0, 0, 1, 1], [], []>} : vector<64x16xf32>, vector<16x256xf32>, vector<64x256xf32> -> vector<64x256xf32>
    %83 = vector.shape_cast %82 : vector<64x256xf32> to vector<4x16x256xf32>
    %84 = vector.shape_cast %80 : vector<16x256xf32> to vector<1x16x256xf32>
    %85 = vector.broadcast %84 : vector<1x16x256xf32> to vector<4x16x256xf32>
    %86 = arith.mulf %83, %85 : vector<4x16x256xf32>
    %cst_16 = arith.constant dense<0.000000e+00> : vector<4x256xf32>
    %87 = vector.multi_reduction <add>, %86, %cst_16 [1] : vector<4x16x256xf32> to vector<4x256xf32>
    %c0_17 = arith.constant 0 : index
    %c0_18 = arith.constant 0 : index
    %88 = vector.load %arg5[%c0_17, %c0_18] : memref<8x256xf32, #tpu.memory_space<vmem>>, vector<4x256xf32>
    tpu.vector_store %arg5[%c0_17, %c0_18], %87 {strides = array<i32>} : memref<8x256xf32, #tpu.memory_space<vmem>>, vector<4x256xf32>,
    %c2_i32_19 = arith.constant 2 : i32
    %89 = arith.muli %arg0, %c2_i32_19 : i32
    %c1_i32_20 = arith.constant 1 : i32
    %90 = arith.addi %89, %c1_i32_20 : i32
    %c6_i32_21 = arith.constant 6 : i32
    %91 = arith.muli %90, %c6_i32_21 : i32
    %c0_i32_22 = arith.constant 0 : i32
    %92 = arith.addi %91, %c0_i32_22 : i32
    %93 = arith.index_cast %92 : i32 to index
    %94 = memref.load %arg2[%93] : memref<12xf32, #tpu.memory_space<smem>>
    %c1_i32_23 = arith.constant 1 : i32
    %95 = arith.addi %91, %c1_i32_23 : i32
    %96 = arith.index_cast %95 : i32 to index
    %97 = memref.load %arg2[%96] : memref<12xf32, #tpu.memory_space<smem>>
    %c2_i32_24 = arith.constant 2 : i32
    %98 = arith.addi %91, %c2_i32_24 : i32
    %99 = arith.index_cast %98 : i32 to index
    %100 = memref.load %arg2[%99] : memref<12xf32, #tpu.memory_space<smem>>
    %c3_i32_25 = arith.constant 3 : i32
    %101 = arith.addi %91, %c3_i32_25 : i32
    %102 = arith.index_cast %101 : i32 to index
    %103 = memref.load %arg2[%102] : memref<12xf32, #tpu.memory_space<smem>>
    %c4_i32_26 = arith.constant 4 : i32
    %104 = arith.addi %91, %c4_i32_26 : i32
    %105 = arith.index_cast %104 : i32 to index
    %106 = memref.load %arg2[%105] : memref<12xf32, #tpu.memory_space<smem>>
    %c5_i32_27 = arith.constant 5 : i32
    %107 = arith.addi %91, %c5_i32_27 : i32
    %108 = arith.index_cast %107 : i32 to index
    %109 = memref.load %arg2[%108] : memref<12xf32, #tpu.memory_space<smem>>
    %110 = vector.broadcast %94 : f32 to vector<1x256xf32>
    %111 = arith.mulf %110, %0 : vector<1x256xf32>
    %112 = vector.broadcast %97 : f32 to vector<1x256xf32>
    %113 = arith.mulf %112, %1 : vector<1x256xf32>
    %114 = arith.addf %111, %113 : vector<1x256xf32>
    %cst_28 = arith.constant 7.500000e+00 : f32
    %115 = arith.addf %100, %cst_28 : f32
    %116 = vector.broadcast %115 : f32 to vector<1x256xf32>
    %117 = arith.addf %114, %116 : vector<1x256xf32>
    %118 = vector.broadcast %103 : f32 to vector<1x256xf32>
    %119 = arith.mulf %118, %0 : vector<1x256xf32>
    %120 = vector.broadcast %106 : f32 to vector<1x256xf32>
    %121 = arith.mulf %120, %1 : vector<1x256xf32>
    %122 = arith.addf %119, %121 : vector<1x256xf32>
    %cst_29 = arith.constant 7.500000e+00 : f32
    %123 = arith.addf %109, %cst_29 : f32
    %124 = vector.broadcast %123 : f32 to vector<1x256xf32>
    %125 = arith.addf %122, %124 : vector<1x256xf32>
    %126 = math.floor %117 : vector<1x256xf32>
    %127 = math.floor %125 : vector<1x256xf32>
    %128 = arith.subf %117, %126 : vector<1x256xf32>
    %129 = arith.subf %125, %127 : vector<1x256xf32>
    %130 = vector.broadcast %126 : vector<1x256xf32> to vector<16x256xf32>
    %131 = arith.cmpf oeq, %3, %130 : vector<16x256xf32>
    %cst_30 = arith.constant 1.000000e+00 : f32
    %132 = vector.broadcast %cst_30 : f32 to vector<1x256xf32>
    %133 = arith.subf %132, %128 : vector<1x256xf32>
    %cst_31 = arith.constant 0.000000e+00 : f32
    %134 = vector.shape_cast %133 : vector<1x256xf32> to vector<1x256xf32>
    %135 = vector.broadcast %134 : vector<1x256xf32> to vector<16x256xf32>
    %136 = vector.broadcast %cst_31 : f32 to vector<16x256xf32>
    %137 = arith.select %131, %135, %136 : vector<16x256xi1>, vector<16x256xf32>
    %cst_32 = arith.constant 1.000000e+00 : f32
    %138 = vector.broadcast %cst_32 : f32 to vector<1x256xf32>
    %139 = arith.addf %126, %138 : vector<1x256xf32>
    %140 = vector.broadcast %139 : vector<1x256xf32> to vector<16x256xf32>
    %141 = arith.cmpf oeq, %3, %140 : vector<16x256xf32>
    %cst_33 = arith.constant 0.000000e+00 : f32
    %142 = vector.shape_cast %128 : vector<1x256xf32> to vector<1x256xf32>
    %143 = vector.broadcast %142 : vector<1x256xf32> to vector<16x256xf32>
    %144 = vector.broadcast %cst_33 : f32 to vector<16x256xf32>
    %145 = arith.select %141, %143, %144 : vector<16x256xi1>, vector<16x256xf32>
    %146 = arith.addf %137, %145 : vector<16x256xf32>
    %147 = vector.broadcast %127 : vector<1x256xf32> to vector<16x256xf32>
    %148 = arith.cmpf oeq, %5, %147 : vector<16x256xf32>
    %cst_34 = arith.constant 1.000000e+00 : f32
    %149 = vector.broadcast %cst_34 : f32 to vector<1x256xf32>
    %150 = arith.subf %149, %129 : vector<1x256xf32>
    %cst_35 = arith.constant 0.000000e+00 : f32
    %151 = vector.shape_cast %150 : vector<1x256xf32> to vector<1x256xf32>
    %152 = vector.broadcast %151 : vector<1x256xf32> to vector<16x256xf32>
    %153 = vector.broadcast %cst_35 : f32 to vector<16x256xf32>
    %154 = arith.select %148, %152, %153 : vector<16x256xi1>, vector<16x256xf32>
    %cst_36 = arith.constant 1.000000e+00 : f32
    %155 = vector.broadcast %cst_36 : f32 to vector<1x256xf32>
    %156 = arith.addf %127, %155 : vector<1x256xf32>
    %157 = vector.broadcast %156 : vector<1x256xf32> to vector<16x256xf32>
    %158 = arith.cmpf oeq, %5, %157 : vector<16x256xf32>
    %cst_37 = arith.constant 0.000000e+00 : f32
    %159 = vector.shape_cast %129 : vector<1x256xf32> to vector<1x256xf32>
    %160 = vector.broadcast %159 : vector<1x256xf32> to vector<16x256xf32>
    %161 = vector.broadcast %cst_37 : f32 to vector<16x256xf32>
    %162 = arith.select %158, %160, %161 : vector<16x256xi1>, vector<16x256xf32>
    %163 = arith.addf %154, %162 : vector<16x256xf32>
    %c64 = arith.constant 64 : index
    %c0_38 = arith.constant 0 : index
    %164 = vector.load %arg4[%c64, %c0_38] : memref<128x16xf32, #tpu.memory_space<vmem>>, vector<64x16xf32>
    %cst_39 = arith.constant dense<0.000000e+00> : vector<64x256xf32>
    %165 = tpu.matmul %164, %146, %cst_39 {dimension_numbers = #tpu.dot_dimension_numbers<[1], [0], [0], [1], [0, 0, 1, 1], [], []>} : vector<64x16xf32>, vector<16x256xf32>, vector<64x256xf32> -> vector<64x256xf32>
    %166 = vector.shape_cast %165 : vector<64x256xf32> to vector<4x16x256xf32>
    %167 = vector.shape_cast %163 : vector<16x256xf32> to vector<1x16x256xf32>
    %168 = vector.broadcast %167 : vector<1x16x256xf32> to vector<4x16x256xf32>
    %169 = arith.mulf %166, %168 : vector<4x16x256xf32>
    %cst_40 = arith.constant dense<0.000000e+00> : vector<4x256xf32>
    %170 = vector.multi_reduction <add>, %169, %cst_40 [1] : vector<4x16x256xf32> to vector<4x256xf32>
    %c4 = arith.constant 4 : index
    %c0_41 = arith.constant 0 : index
    %171 = vector.load %arg5[%c4, %c0_41] : memref<8x256xf32, #tpu.memory_space<vmem>>, vector<4x256xf32>
    tpu.vector_store %arg5[%c4, %c0_41], %170 {strides = array<i32>} : memref<8x256xf32, #tpu.memory_space<vmem>>, vector<4x256xf32>,
    return
  }
  func.func @transform_0(%arg0: i32, %arg1: i32) -> i32 {
    %c0_i32 = arith.constant 0 : i32
    %c0_i32_0 = arith.constant 0 : i32
    return %c0_i32 : i32
  }
  func.func @transform_1(%arg0: i32, %arg1: i32) -> (i32, i32) {
    %c0_i32 = arith.constant 0 : i32
    %c0_i32_0 = arith.constant 0 : i32
    return %c0_i32, %arg1 : i32, i32
  }
  func.func @transform_2(%arg0: i32, %arg1: i32) -> (i32, i32) {
    %c0_i32 = arith.constant 0 : i32
    %c0_i32_0 = arith.constant 0 : i32
    return %arg0, %c0_i32 : i32, i32
  }
  func.func @transform_3(%arg0: i32, %arg1: i32) -> (i32, i32) {
    %c0_i32 = arith.constant 0 : i32
    return %arg0, %arg1 : i32, i32
  }
}

</mosaic_0001>

<bundles_post_ra>
// kernel: tpu_custom_call.1
= control target key start
LH: loop header
LB: loop body
LE: loop exit
PB: predicated region body
PF: predicated region fallthrough
CT: control target
= control target key end

     0   :  { %8 = vsyncpa [#allocation4], 0  ;;  %s1237_s0 = inlined_call_operand.vmem [shape: f32[12], index: 0, kind: input, shape index: {}]   ;;  %s1238_s1 = inlined_call_operand.vmem [shape: f32[2,256], index: 1, kind: input, shape index: {}]   ;;  %s1239_s2 = inlined_call_operand.vmem [shape: f32[128,16], index: 2, kind: input, shape index: {}]   ;;  %s1240_s3 = inlined_call_operand.hbm [shape: f32[8,256], index: 3, kind: output, shape index: {}]  }
   0x1   :  { %9 = vsyncpa [#allocation3], 0  ;;  %s16_s14 = sshll.u32 %s1237_s0, 4  ;;  %s17_s14 = int_to_ptr.vmem [resolvable:$true] %s16_s14 }
   0x2   :  { %s897_s15 = scalar_lea.vmem %s17_s14, 16  ;;  %p902_p1 = scmp.lt.s32.totalorder %s17_s14, %s17_s14 }
   0x3   :  { %p898_p0 = scmp.ne.s32.totalorder %s17_s14, %s897_s15  ;;  %p903_p2 = scmp.lt.s32.totalorder %s897_s15, %s897_s15 }
   0x5   :  { %p904_p3 = por %p903_p2, %p902_p1 }
   0x7   :  { %p905_p4 = pnand %p904_p3, %p898_p0 }
   0x9   :  { %908 = shalt.err (!%p905_p4)
}
   0xa   :  { %s935_s16 = smov [#allocation2]  }
   0xb   :  { %19 = dma.vmem_to_smem %s17_s14, 16, %s935_s16, [#allocation4]  }
   0xc   :  { %931 = dma.done.wait [#allocation4], 16  }
   0xd   :  { %932 = vsyncadd [#allocation4], 4294967280 }
   0xe   :  { %27 = sfence }
   0xf   :  { %s37_s17 = sld [smem:[#allocation2]]  ;;  %s859_s18 = sld [smem:[#allocation2 + $0x1]]  ;;  %v31_v0 = vlaneseq  ;;  %v936_v1 = vmov 0.0   ;;  %v966_v2 = vld [vmem:[%s1238_s1] ss:$2 sm:$0x3] }
  0x10   :  { %s860_s19 = sld [smem:[#allocation2 + $0x2]]  ;;  %s872_s20 = sld [smem:[#allocation2 + $0x6]]  ;;  %297 = vmatprep.mubr.f32.mxu0 %v936_v1  ;;  %701 = vmatprep.mubr.f32.mxu1 %v936_v1  ;;  %v971_v3 = vld [vmem:[%s1238_s1 + $0x1] ss:$2 sm:$0x3] }
  0x11   :  { %s873_s0 = sld [smem:[#allocation2 + $0x7]]  ;;  %s874_s21 = sld [smem:[#allocation2 + $0x8]]  ;;  %v32_v4 = vshrl.u32 %v31_v0, 7 }
  0x12   :  { %s861_s30 = sld [smem:[#allocation2 + $0x3]]  ;;  %s862_s4 = sld [smem:[#allocation2 + $0x4]] }
  0x13   :  { %v33_v12 = vadd.s32 8, %v32_v4  ;;  %v977_v18 = vsub.s32 1, %v32_v4  ;;  %v979_v20 = vsub.s32 0, %v32_v4  ;;  %v981_v21 = vcvt.s32.f32 %v32_v4  ;;  %s863_s5 = sld [smem:[#allocation2 + $0x5]]  ;;  %s875_s6 = sld [smem:[#allocation2 + $0x9]] }
  0x14   :  { %s876_s7 = sld [smem:[#allocation2 + $0xa]]  ;;  %s877_s8 = sld [smem:[#allocation2 + $0xb]] }
  0x15   :  { %v48_v5 = vstv %s37_s17  ;;  %v50_v6 = vstv %s859_s18  ;;  %v983_v22 = vcvt.s32.f32 %v33_v12  ;;  %s937_s10 = smov [#allocation5]  }
  0x16   :  { %v49_v7 = vmul.f32 %v48_v5, %v966_v2  ;;  %v51_v8 = vmul.f32 %v971_v3, %v50_v6  ;;  %s53_s26 = sadd.f32 7.5, %s860_s19  ;;  %v453_v9 = vstv %s872_s20  ;;  %s849_s11 = sshll.u32 %s937_s10, 4  ;;  %s850_s11 = int_to_ptr.vmem [resolvable:$true] %s849_s11 }
  0x17   :  { %v454_v10 = vmul.f32 %v453_v9, %v966_v2  ;;  %v455_v11 = vstv %s873_s0  ;;  %s458_s27 = sadd.f32 7.5, %s874_s21  ;;  %s909_s12 = scalar_lea.vmem %s850_s11, 256 }
  0x18   :  { %v52_v13 = vadd.f32 %v51_v8, %v49_v7  ;;  %v54_v14 = vstv %s53_s26  ;;  %v456_v15 = vmul.f32 %v971_v3, %v455_v11  ;;  %p910_p5 = scmp.ne.s32.totalorder %s850_s11, %s909_s12  ;;  %p914_p6 = scmp.lt.s32.totalorder %s850_s11, %s850_s11 }
  0x19   :  { %v459_v16 = vstv %s458_s27  ;;  %s61_s9 = sadd.f32 7.5, %s863_s5  ;;  %p915_p7 = scmp.lt.s32.totalorder %s909_s12, %s909_s12 }
  0x1a   :  { %v55_v17 = vadd.f32 %v54_v14, %v52_v13  ;;  %v457_v19 = vadd.f32 %v456_v15, %v454_v10  ;;  %v200_v14 = vld [vmem:[%s1239_s2] sm:$0xff] }
  0x1b   :  { %p916_p8 = por %p915_p7, %p914_p6 }
  0x1c   :  { %v64_v23 = vfloor.f32 %v55_v17  ;;  %v460_v24 = vadd.f32 %v459_v16, %v457_v19  ;;  %v605_v16 = vld [vmem:[%s1239_s2 + $0x40] sm:$0xff]  ;;  %v606_v19 = vld [vmem:[%s1239_s2 + $0x48] sm:$0xff] }
  0x1d   :  { %p917_p9 = pnand %p916_p8, %p910_p5 }
  0x1e   :  { %v66_v25 = vsub.f32 %v55_v17, %v64_v23  ;;  %v76_v26 = vrot.slane %v64_v23, %v977_v18  ;;  %v99_v27 = vadd.f32 1.0, %v64_v23  ;;  %v469_v28 = vfloor.f32 %v460_v24  ;;  %v201_v17 = vld [vmem:[%s1239_s2 + $0x8] sm:$0xff] }
  0x1f   :  { %v72_v29 = vrot.slane %v64_v23, %v979_v20  ;;  %v202_v23 = vld [vmem:[%s1239_s2 + $0x10] sm:$0xff] }
  0x20   :  { %vm80_vm0 = vcmp.eq.f32.partialorder %v981_v21, %v76_v26  ;;  %vm82_vm1 = vcmp.eq.f32.partialorder %v983_v22, %v76_v26  ;;  %v83_v30 = vsub.f32 1.0, %v66_v25  ;;  %v108_v31 = vrot.slane %v99_v27, %v977_v18  ;;  %v608_v26 = vld [vmem:[%s1239_s2 + $0x58] sm:$0xff] }
  0x21   :  { %v123_v32 = vrot.slane %v66_v25, %v977_v18  ;;  %v471_v33 = vsub.f32 %v460_v24, %v469_v28  ;;  %v481_v34 = vrot.slane %v469_v28, %v977_v18  ;;  %v504_v35 = vadd.f32 1.0, %v469_v28  ;;  %v607_v24 = vld [vmem:[%s1239_s2 + $0x50] sm:$0xff] }
  0x22   :  { %v92_v36 = vrot.slane %v83_v30, %v977_v18  ;;  %vm112_vm2 = vcmp.eq.f32.partialorder %v981_v21, %v108_v31  ;;  %vm114_vm3 = vcmp.eq.f32.partialorder %v983_v22, %v108_v31  ;;  %vm79_vm4 = vcmp.eq.f32.partialorder %v981_v21, %v72_v29  ;;  %v206_v31 = vld [vmem:[%s1239_s2 + $0x30] sm:$0xff] }
  0x23   :  { %v127_v37 = vsel %vm112_vm2, %v123_v32, 0.0  ;;  %v129_v38 = vsel %vm114_vm3, %v123_v32, 0.0  ;;  %vm485_vm5 = vcmp.eq.f32.partialorder %v981_v21, %v481_v34  ;;  %vm487_vm6 = vcmp.eq.f32.partialorder %v983_v22, %v481_v34  ;;  %v611_v32 = vld [vmem:[%s1239_s2 + $0x70] sm:$0xff]  ;;  %v612_v34 = vld [vmem:[%s1239_s2 + $0x78] sm:$0xff] }
  0x24   :  { %v96_v39 = vsel %vm80_vm0, %v92_v36, 0.0  ;;  %v98_v40 = vsel %vm82_vm1, %v92_v36, 0.0  ;;  %v488_v41 = vsub.f32 1.0, %v471_v33  ;;  %v513_v42 = vrot.slane %v504_v35, %v977_v18 }
  0x25   :  { %v131_v43 = vadd.f32 %v127_v37, %v96_v39  ;;  %v133_v44 = vadd.f32 %v129_v38, %v98_v40  ;;  %v528_v45 = vrot.slane %v471_v33, %v977_v18  ;;  %vm81_vm7 = vcmp.eq.f32.partialorder %v983_v22, %v72_v29  ;;  %v205_v29 = vld [vmem:[%s1239_s2 + $0x28] sm:$0xff] }
  0x26   :  { %v497_v46 = vrot.slane %v488_v41, %v977_v18  ;;  %vm517_vm8 = vcmp.eq.f32.partialorder %v981_v21, %v513_v42  ;;  %vm519_vm9 = vcmp.eq.f32.partialorder %v983_v22, %v513_v42  ;;  %v88_v47 = vrot.slane %v83_v30, %v979_v20  ;;  %v610_v30 = vld [vmem:[%s1239_s2 + $0x68] sm:$0xff] }
  0x27   :  { %v886_v48 = vpack.c.bf16 %v133_v44, %v131_v43  ;;  %v532_v49 = vsel %vm517_vm8, %v528_v45, 0.0  ;;  %v534_v50 = vsel %vm519_vm9, %v528_v45, 0.0  ;;  %v104_v51 = vrot.slane %v99_v27, %v979_v20  ;;  %v204_v27 = vld [vmem:[%s1239_s2 + $0x20] sm:$0xff] }
  0x28   :  { %v501_v52 = vsel %vm485_vm5, %v497_v46, 0.0  ;;  %v503_v53 = vsel %vm487_vm6, %v497_v46, 0.0  ;;  %v95_v54 = vsel %vm79_vm4, %v88_v47, 0.0  ;;  %v97_v55 = vsel %vm81_vm7, %v88_v47, 0.0 }
  0x29   :  { %887 = vmatprep.subr.bf16.mxu0 %v886_v48  ;;  %v536_v56 = vadd.f32 %v532_v49, %v501_v52  ;;  %v538_v57 = vadd.f32 %v534_v50, %v503_v53  ;;  %vm111_vm10 = vcmp.eq.f32.partialorder %v981_v21, %v104_v51  ;;  %vm113_vm11 = vcmp.eq.f32.partialorder %v983_v22, %v104_v51 }
  0x2a   :  { %v119_v58 = vrot.slane %v66_v25, %v979_v20  ;;  %v477_v59 = vrot.slane %v469_v28, %v979_v20  ;;  %v493_v60 = vrot.slane %v488_v41, %v979_v20  ;;  %v509_v61 = vrot.slane %v504_v35, %v979_v20  ;;  %v203_v25 = vld [vmem:[%s1239_s2 + $0x18] sm:$0xff]  ;;  %v609_v28 = vld [vmem:[%s1239_s2 + $0x60] sm:$0xff] }
  0x2b   :  { %v890_v62 = vpack.c.bf16 %v538_v57, %v536_v56  ;;  %v524_v63 = vrot.slane %v471_v33, %v979_v20  ;;  %vm208_vm0 = vcmask 130048   ;;  %v207_v33 = vld [vmem:[%s1239_s2 + $0x38] sm:$0xff]  ;;  %v56_v35 = vstv %s861_s30  ;;  %s466_s2 = sadd.f32 7.5, %s877_s8 }
  0x2c   :  { %v126_v0 = vsel %vm111_vm10, %v119_v58, 0.0  ;;  %v128_v4 = vsel %vm113_vm11, %v119_v58, 0.0  ;;  %vm484_vm12 = vcmp.eq.f32.partialorder %v981_v21, %v477_v59  ;;  %vm486_vm13 = vcmp.eq.f32.partialorder %v983_v22, %v477_v59 }
  0x2d   :  { %891 = vmatprep.subr.bf16.mxu1 %v890_v62  ;;  %v130_v5 = vadd.f32 %v126_v0, %v95_v54  ;;  %v132_v6 = vadd.f32 %v128_v4, %v97_v55  ;;  %v500_v7 = vsel %vm484_vm12, %v493_v60, 0.0  ;;  %v502_v8 = vsel %vm486_vm13, %v493_v60, 0.0 }
  0x2e   :  { %vm516_vm14 = vcmp.eq.f32.partialorder %v981_v21, %v509_v61  ;;  %vm518_vm15 = vcmp.eq.f32.partialorder %v983_v22, %v509_v61  ;;  %v58_v36 = vstv %s862_s4  ;;  %v57_v37 = vmul.f32 %v56_v35, %v966_v2 }
  0x2f   :  { %v888_v9 = vpack.c.bf16 %v132_v6, %v130_v5  ;;  %v531_v10 = vsel %vm516_vm14, %v524_v63, 0.0  ;;  %v533_v11 = vsel %vm518_vm15, %v524_v63, 0.0  ;;  %v461_v38 = vstv %s875_s6 }
  0x30   :  { %v535_v12 = vadd.f32 %v531_v10, %v500_v7  ;;  %v537_v13 = vadd.f32 %v533_v11, %v502_v8  ;;  %v463_v39 = vstv %s876_s7  ;;  %v62_v41 = vstv %s61_s9 }
  0x31   :  { %889 = vmatpush1.bf16.msra.mxu0 %v888_v9  ;;  %v462_v42 = vmul.f32 %v461_v38, %v966_v2  ;;  %v464_v43 = vmul.f32 %v971_v3, %v463_v39  ;;  %v467_v46 = vstv %s466_s2 }
  0x32   :  { %v892_v15 = vpack.c.bf16 %v537_v13, %v535_v12 }
  0x33   :  { %v465_v45 = vadd.f32 %v464_v43, %v462_v42 }
  0x34   :  { %893 = vmatpush1.bf16.msra.mxu1 %v892_v15  ;;  %864 = vmatmul.mubr.msk.f32.vlgmr.msra.gmra.mrb[0].mxu0 %vm208_vm0, %v200_v14 }
  0x35   :  { %303 = vmatprep.mubr.f32.mxu0 %v936_v1  ;;  %v468_v48 = vadd.f32 %v467_v46, %v465_v45 }
  0x37   :  { %878 = vmatmul.mubr.msk.f32.vlgmr.msra.gmra.mrb[0].mxu1 %vm208_vm0, %v605_v16  ;;  %v470_v50 = vfloor.f32 %v468_v48 }
  0x38   :  { %707 = vmatprep.mubr.f32.mxu1 %v936_v1  ;;  %865 = vmatmul.mubr.msk.f32.gmra.mrb[2].mxu0 %vm208_vm0, %v201_v17 }
  0x39   :  { %309 = vmatprep.mubr.f32.mxu0 %v936_v1  ;;  %v472_v54 = vsub.f32 %v468_v48, %v470_v50  ;;  %v570_v56 = vadd.f32 1.0, %v470_v50  ;;  %v543_v60 = vrot.slane %v470_v50, %v979_v20  ;;  %v547_v4 = vrot.slane %v470_v50, %v977_v18 }
  0x3b   :  { %879 = vmatmul.mubr.msk.f32.gmra.mrb[2].mxu1 %vm208_vm0, %v606_v19  ;;  %v554_v59 = vsub.f32 1.0, %v472_v54  ;;  %v575_v61 = vrot.slane %v570_v56, %v979_v20  ;;  %v590_v7 = vrot.slane %v472_v54, %v979_v20  ;;  %v579_v8 = vrot.slane %v570_v56, %v977_v18 }
  0x3c   :  { %713 = vmatprep.mubr.f32.mxu1 %v936_v1  ;;  %866 = vmatmul.mubr.msk.f32.gmra.mrb[4].mxu0 %vm208_vm0, %v202_v23  ;;  %vm550_vm5 = vcmp.eq.f32.partialorder %v981_v21, %v543_v60  ;;  %vm551_vm11 = vcmp.eq.f32.partialorder %v981_v21, %v547_v4  ;;  %v594_v11 = vrot.slane %v472_v54, %v977_v18 }
  0x3d   :  { %315 = vmatprep.mubr.f32.mxu0 %v936_v1  ;;  %v559_v6 = vrot.slane %v554_v59, %v979_v20  ;;  %vm582_vm6 = vcmp.eq.f32.partialorder %v981_v21, %v575_v61  ;;  %vm552_vm12 = vcmp.eq.f32.partialorder %v983_v22, %v543_v60  ;;  %vm583_vm13 = vcmp.eq.f32.partialorder %v981_v21, %v579_v8 }
  0x3e   :  { %vm584_vm14 = vcmp.eq.f32.partialorder %v983_v22, %v575_v61  ;;  %vm553_vm15 = vcmp.eq.f32.partialorder %v983_v22, %v547_v4  ;;  %v597_v19 = vsel %vm582_vm6, %v590_v7, 0.0  ;;  %vm834_vm6 = vcmask 1047559  }
  0x3f   :  { %880 = vmatmul.mubr.msk.f32.gmra.mrb[4].mxu1 %vm208_vm0, %v607_v24 }
  0x40   :  { %719 = vmatprep.mubr.f32.mxu1 %v936_v1  ;;  %867 = vmatmul.mubr.msk.f32.gmra.mrb[6].mxu0 %vm208_vm0, %v203_v25 }
  0x41   :  { %321 = vmatprep.mubr.f32.mxu0 %v936_v1 }
  0x43   :  { %881 = vmatmul.mubr.msk.f32.gmra.mrb[6].mxu1 %vm208_vm0, %v608_v26 }
  0x44   :  { %725 = vmatprep.mubr.f32.mxu1 %v936_v1  ;;  %868 = vmatmul.mubr.msk.f32.gmra.mrb[8].mxu0 %vm208_vm0, %v204_v27  ;;  %v568_v27 = vsel %vm552_vm12, %v559_v6, 0.0 }
  0x45   :  { %327 = vmatprep.mubr.f32.mxu0 %v936_v1 }
  0x47   :  { %882 = vmatmul.mubr.msk.f32.gmra.mrb[8].mxu1 %vm208_vm0, %v609_v28  ;;  %v599_v28 = vsel %vm584_vm14, %v590_v7, 0.0 }
  0x48   :  { %731 = vmatprep.mubr.f32.mxu1 %v936_v1  ;;  %869 = vmatmul.mubr.msk.f32.gmra.mrb[10].mxu0 %vm208_vm0, %v205_v29  ;;  %v598_v29 = vsel %vm583_vm13, %v594_v11, 0.0 }
  0x49   :  { %333 = vmatprep.mubr.f32.mxu0 %v936_v1 }
  0x4b   :  { %883 = vmatmul.mubr.msk.f32.gmra.mrb[10].mxu1 %vm208_vm0, %v610_v30 }
  0x4c   :  { %737 = vmatprep.mubr.f32.mxu1 %v936_v1  ;;  %870 = vmatmul.mubr.msk.f32.gmra.mrb[12].mxu0 %vm208_vm0, %v206_v31 }
  0x4d   :  { %339 = vmatprep.mubr.f32.mxu0 %v936_v1 }
  0x4f   :  { %884 = vmatmul.mubr.msk.f32.gmra.mrb[12].mxu1 %vm208_vm0, %v611_v32 }
  0x50   :  { %743 = vmatprep.mubr.f32.mxu1 %v936_v1  ;;  %871 = vmatmul.mubr.msk.f32.gmra.mrb[14].mxu0 %vm208_vm0, %v207_v33  ;;  %v59_v1 = vmul.f32 %v971_v3, %v58_v36 }
  0x52   :  { %v60_v40 = vadd.f32 %v59_v1, %v57_v37  ;;  %v1161_v37 = vadd.f32 %v599_v28, %v568_v27 }
  0x53   :  { %885 = vmatmul.mubr.msk.f32.gmra.mrb[14].mxu1 %vm208_vm0, %v612_v34  ;;  %vm585_vm0 = vcmp.eq.f32.partialorder %v983_v22, %v579_v8 }
  0x54   :  { %v63_v44 = vadd.f32 %v62_v41, %v60_v40  ;;  %v600_v32 = vsel %vm585_vm0, %v594_v11, 0.0 }
  0x56   :  { %v65_v47 = vfloor.f32 %v63_v44 }
  0x58   :  { %v67_v49 = vsub.f32 %v63_v44, %v65_v47  ;;  %v165_v51 = vadd.f32 1.0, %v65_v47  ;;  %v138_v53 = vrot.slane %v65_v47, %v979_v20  ;;  %v142_v3 = vrot.slane %v65_v47, %v977_v18 }
  0x5a   :  { %v149_v52 = vsub.f32 1.0, %v67_v49  ;;  %v170_v55 = vrot.slane %v165_v51, %v979_v20  ;;  %v174_v57 = vrot.slane %v165_v51, %v977_v18  ;;  %vm145_vm1 = vcmp.eq.f32.partialorder %v981_v21, %v138_v53 }
  0x5b   :  { %v185_v58 = vrot.slane %v67_v49, %v979_v20  ;;  %v189_v63 = vrot.slane %v67_v49, %v977_v18  ;;  %vm146_vm3 = vcmp.eq.f32.partialorder %v981_v21, %v142_v3  ;;  %vm147_vm7 = vcmp.eq.f32.partialorder %v983_v22, %v138_v53 }
  0x5c   :  { %v154_v2 = vrot.slane %v149_v52, %v979_v20  ;;  %vm177_vm2 = vcmp.eq.f32.partialorder %v981_v21, %v170_v55  ;;  %v158_v62 = vrot.slane %v149_v52, %v977_v18  ;;  %vm178_vm4 = vcmp.eq.f32.partialorder %v981_v21, %v174_v57 }
  0x5d   :  { %v192_v5 = vsel %vm177_vm2, %v185_v58, 0.0  ;;  %vm179_vm8 = vcmp.eq.f32.partialorder %v983_v22, %v170_v55  ;;  %v193_v10 = vsel %vm178_vm4, %v189_v63, 0.0  ;;  %vm148_vm9 = vcmp.eq.f32.partialorder %v983_v22, %v142_v3 }
  0x5e   :  { %v161_v0 = vsel %vm145_vm1, %v154_v2, 0.0  ;;  %v162_v9 = vsel %vm146_vm3, %v158_v62, 0.0  ;;  %vm180_vm10 = vcmp.eq.f32.partialorder %v983_v22, %v174_v57  ;;  %v563_v20 = vrot.slane %v554_v59, %v977_v18 }
  0x5f   :  { %v163_v12 = vsel %vm147_vm7, %v154_v2, 0.0  ;;  %v194_v13 = vsel %vm179_vm8, %v185_v58, 0.0  ;;  %v164_v14 = vsel %vm148_vm9, %v158_v62, 0.0  ;;  %v195_v15 = vsel %vm180_vm10, %v189_v63, 0.0 }
  0x60   :  { %v1141_v16 = vadd.f32 %v192_v5, %v161_v0  ;;  %v566_v18 = vsel %vm550_vm5, %v559_v6, 0.0  ;;  %v1147_v23 = vadd.f32 %v193_v10, %v162_v9  ;;  %v567_v25 = vsel %vm551_vm11, %v563_v20, 0.0 }
  0x61   :  { %v1151_v26 = vadd.f32 %v194_v13, %v163_v12  ;;  %v1157_v30 = vadd.f32 %v195_v15, %v164_v14  ;;  %v569_v31 = vsel %vm553_vm15, %v563_v20, 0.0  ;;  %v1159_v34 = vadd.f32 %v597_v19, %v566_v18 }
  0x62   :  { %v1164_v38 = vadd.f32 %v598_v29, %v567_v25  ;;  %v1167_v21 = vadd.f32 %v600_v32, %v569_v31  ;;  %vm426_vm1 = vcmask 1041409   ;;  %vm428_vm2 = vcmask 1042434  }
  0x63   :  { %vm830_vm3 = vcmask 1045509   ;;  %vm832_vm4 = vcmask 1046534   ;;  %vm430_vm5 = vcmask 1043459  }
 0x107   :  { %v299_v17 = vpop.f32.mrb[0].mxu0 }
 0x108   :  { %v301_v24 = vpop.f32.mrb[1].mxu0  ;;  %v346_v1 = vmul.f32 %v299_v17, %v1141_v16 }
 0x109   :  { %v347_v40 = vmul.f32 %v301_v24, %v1147_v23 }
 0x10a   :  { %v703_v33 = vpop.f32.mrb[0].mxu1 }
 0x10b   :  { %v705_v35 = vpop.f32.mrb[1].mxu1  ;;  %v305_v36 = vpop.f32.mrb[2].mxu0  ;;  %v750_v44 = vmul.f32 %v703_v33, %v1159_v34 }
 0x10c   :  { %v348_v22 = vmul.f32 %v305_v36, %v1151_v26  ;;  %v307_v39 = vpop.f32.mrb[3].mxu0  ;;  %v751_v49 = vmul.f32 %v705_v35, %v1164_v38 }
 0x10d   :  { %v349_v41 = vmul.f32 %v307_v39, %v1157_v30 }
 0x10e   :  { %v362_v42 = vadd.f32 %v348_v22, %v346_v1  ;;  %v709_v43 = vpop.f32.mrb[2].mxu1 }
 0x10f   :  { %v752_v45 = vmul.f32 %v709_v43, %v1161_v37  ;;  %v369_v46 = vadd.f32 %v349_v41, %v347_v40  ;;  %v711_v47 = vpop.f32.mrb[3].mxu1  ;;  %v311_v48 = vpop.f32.mrb[4].mxu0 }
 0x110   :  { %v363_v50 = vrot.slane %v362_v42, 4  ;;  %v753_v51 = vmul.f32 %v711_v47, %v1167_v21  ;;  %v313_v52 = vpop.f32.mrb[5].mxu0  ;;  %v350_v58 = vmul.f32 %v311_v48, %v1141_v16 }
 0x111   :  { %v766_v53 = vadd.f32 %v752_v45, %v750_v44  ;;  %v370_v54 = vrot.slane %v369_v46, 4  ;;  %v351_v63 = vmul.f32 %v313_v52, %v1147_v23 }
 0x112   :  { %v364_v55 = vadd.f32 %v363_v50, %v362_v42  ;;  %v773_v56 = vadd.f32 %v753_v51, %v751_v49  ;;  %v715_v2 = vpop.f32.mrb[4].mxu1 }
 0x113   :  { %v767_v3 = vrot.slane %v766_v53, 4  ;;  %v371_v57 = vadd.f32 %v370_v54, %v369_v46  ;;  %v717_v59 = vpop.f32.mrb[5].mxu1  ;;  %v317_v60 = vpop.f32.mrb[6].mxu0  ;;  %v754_v7 = vmul.f32 %v715_v2, %v1159_v34 }
 0x114   :  { %v365_v61 = vrot.slane %v364_v55, 2  ;;  %v774_v62 = vrot.slane %v773_v56, 4  ;;  %v352_v0 = vmul.f32 %v317_v60, %v1151_v26  ;;  %v319_v4 = vpop.f32.mrb[7].mxu0  ;;  %v755_v20 = vmul.f32 %v717_v59, %v1164_v38 }
 0x115   :  { %v768_v5 = vadd.f32 %v767_v3, %v766_v53  ;;  %v372_v6 = vrot.slane %v371_v57, 2  ;;  %v353_v8 = vmul.f32 %v319_v4, %v1157_v30 }
 0x116   :  { %v366_v9 = vadd.f32 %v365_v61, %v364_v55  ;;  %v775_v10 = vadd.f32 %v774_v62, %v773_v56  ;;  %v376_v11 = vadd.f32 %v352_v0, %v350_v58  ;;  %v721_v12 = vpop.f32.mrb[6].mxu1 }
 0x117   :  { %v769_v13 = vrot.slane %v768_v5, 2  ;;  %v373_v14 = vadd.f32 %v372_v6, %v371_v57  ;;  %v756_v15 = vmul.f32 %v721_v12, %v1161_v37  ;;  %v383_v17 = vadd.f32 %v353_v8, %v351_v63  ;;  %v723_v18 = vpop.f32.mrb[7].mxu1  ;;  %v323_v19 = vpop.f32.mrb[8].mxu0 }
 0x118   :  { %v367_v24 = vrot.slane %v366_v9, 1  ;;  %v776_v25 = vrot.slane %v775_v10, 2  ;;  %v377_v27 = vrot.slane %v376_v11, 4  ;;  %v757_v28 = vmul.f32 %v723_v18, %v1167_v21  ;;  %v325_v29 = vpop.f32.mrb[9].mxu0 }
 0x119   :  { %v770_v31 = vadd.f32 %v769_v13, %v768_v5  ;;  %v374_v32 = vrot.slane %v373_v14, 1  ;;  %v780_v33 = vadd.f32 %v756_v15, %v754_v7  ;;  %v384_v35 = vrot.slane %v383_v17, 4 }
 0x11a   :  { %v1183_v36 = vadd.f32 %v367_v24, %v366_v9  ;;  %v777_v1 = vadd.f32 %v776_v25, %v775_v10  ;;  %v378_v22 = vadd.f32 %v377_v27, %v376_v11  ;;  %v787_v39 = vadd.f32 %v757_v28, %v755_v20  ;;  %v727_v40 = vpop.f32.mrb[8].mxu1 }
 0x11b   :  { %v771_v41 = vrot.slane %v770_v31, 1  ;;  %v1185_v42 = vadd.f32 %v374_v32, %v373_v14  ;;  %v781_v43 = vrot.slane %v780_v33, 4  ;;  %v385_v44 = vadd.f32 %v384_v35, %v383_v17  ;;  %v729_v45 = vpop.f32.mrb[9].mxu1  ;;  %v329_v46 = vpop.f32.mrb[10].mxu0 }
 0x11c   :  { %v778_v47 = vrot.slane %v777_v1, 1  ;;  %v379_v48 = vrot.slane %v378_v22, 2  ;;  %v788_v49 = vrot.slane %v787_v39, 4  ;;  %v354_v50 = vmul.f32 %v323_v19, %v1141_v16  ;;  %v331_v51 = vpop.f32.mrb[11].mxu0 }
 0x11d   :  { %v1188_v52 = vadd.f32 %v771_v41, %v770_v31  ;;  %v782_v53 = vadd.f32 %v781_v43, %v780_v33  ;;  %v386_v54 = vrot.slane %v385_v44, 2  ;;  %v758_v55 = vmul.f32 %v727_v40, %v1159_v34 }
 0x11e   :  { %v1191_v56 = vadd.f32 %v778_v47, %v777_v1  ;;  %v380_v2 = vadd.f32 %v379_v48, %v378_v22  ;;  %v789_v3 = vadd.f32 %v788_v49, %v787_v39  ;;  %v355_v57 = vmul.f32 %v325_v29, %v1147_v23  ;;  %v733_v58 = vpop.f32.mrb[10].mxu1 }
 0x11f   :  { %v783_v59 = vrot.slane %v782_v53, 2  ;;  %v387_v60 = vadd.f32 %v386_v54, %v385_v44  ;;  %v759_v61 = vmul.f32 %v729_v45, %v1164_v38  ;;  %v356_v62 = vmul.f32 %v329_v46, %v1151_v26  ;;  %v735_v63 = vpop.f32.mrb[11].mxu1  ;;  %v335_v0 = vpop.f32.mrb[12].mxu0 }
 0x120   :  { %v381_v4 = vrot.slane %v380_v2, 1  ;;  %v790_v5 = vrot.slane %v789_v3, 2  ;;  %v760_v6 = vmul.f32 %v733_v58, %v1161_v37  ;;  %v357_v7 = vmul.f32 %v331_v51, %v1157_v30  ;;  %v337_v8 = vpop.f32.mrb[13].mxu0 }
 0x121   :  { %v784_v9 = vadd.f32 %v783_v59, %v782_v53  ;;  %v388_v10 = vrot.slane %v387_v60, 1  ;;  %v390_v20 = vadd.f32 %v356_v62, %v354_v50  ;;  %v761_v11 = vmul.f32 %v735_v63, %v1167_v21 }
 0x122   :  { %v1199_v12 = vadd.f32 %v381_v4, %v380_v2  ;;  %v791_v13 = vadd.f32 %v790_v5, %v789_v3  ;;  %v794_v14 = vadd.f32 %v760_v6, %v758_v55  ;;  %v397_v15 = vadd.f32 %v357_v7, %v355_v57  ;;  %v739_v17 = vpop.f32.mrb[12].mxu1 }
 0x123   :  { %v785_v18 = vrot.slane %v784_v9, 1  ;;  %v1201_v19 = vadd.f32 %v388_v10, %v387_v60  ;;  %v391_v24 = vrot.slane %v390_v20, 4  ;;  %v801_v25 = vadd.f32 %v761_v11, %v759_v61  ;;  %v741_v27 = vpop.f32.mrb[13].mxu1  ;;  %v341_v28 = vpop.f32.mrb[14].mxu0 }
 0x124   :  { %v792_v29 = vrot.slane %v791_v13, 1  ;;  %v795_v31 = vrot.slane %v794_v14, 4  ;;  %v398_v32 = vrot.slane %v397_v15, 4  ;;  %v358_v33 = vmul.f32 %v335_v0, %v1141_v16  ;;  %v343_v35 = vpop.f32.mrb[15].mxu0 }
 0x125   :  { %v786_v1 = vadd.f32 %v785_v18, %v784_v9  ;;  %v392_v22 = vadd.f32 %v391_v24, %v390_v20  ;;  %v802_v39 = vrot.slane %v801_v25, 4  ;;  %v762_v40 = vmul.f32 %v739_v17, %v1159_v34 }
 0x126   :  { %v793_v41 = vadd.f32 %v792_v29, %v791_v13  ;;  %v796_v43 = vadd.f32 %v795_v31, %v794_v14  ;;  %v399_v44 = vadd.f32 %v398_v32, %v397_v15  ;;  %v359_v45 = vmul.f32 %v337_v8, %v1147_v23  ;;  %v745_v46 = vpop.f32.mrb[14].mxu1 }
 0x127   :  { %v393_v47 = vrot.slane %v392_v22, 2  ;;  %v803_v48 = vadd.f32 %v802_v39, %v801_v25  ;;  %v763_v49 = vmul.f32 %v741_v27, %v1164_v38  ;;  %v360_v16 = vmul.f32 %v341_v28, %v1151_v26  ;;  %v747_v50 = vpop.f32.mrb[15].mxu1 }
 0x128   :  { %v797_v51 = vrot.slane %v796_v43, 2  ;;  %v400_v53 = vrot.slane %v399_v44, 2  ;;  %v764_v34 = vmul.f32 %v745_v46, %v1161_v37  ;;  %v361_v54 = vmul.f32 %v343_v35, %v1157_v30 }
 0x129   :  { %v394_v55 = vadd.f32 %v393_v47, %v392_v22  ;;  %v804_v2 = vrot.slane %v803_v48, 2  ;;  %v404_v3 = vadd.f32 %v360_v16, %v358_v33  ;;  %v765_v23 = vmul.f32 %v747_v50, %v1167_v21 }
 0x12a   :  { %v798_v57 = vadd.f32 %v797_v51, %v796_v43  ;;  %v401_v58 = vadd.f32 %v400_v53, %v399_v44  ;;  %v808_v59 = vadd.f32 %v764_v34, %v762_v40  ;;  %v411_v60 = vadd.f32 %v361_v54, %v359_v45 }
 0x12b   :  { %v395_v38 = vrot.slane %v394_v55, 1  ;;  %v805_v61 = vadd.f32 %v804_v2, %v803_v48  ;;  %v405_v26 = vrot.slane %v404_v3, 4  ;;  %v815_v62 = vadd.f32 %v765_v23, %v763_v49 }
 0x12c   :  { %v799_v63 = vrot.slane %v798_v57, 1  ;;  %v402_v0 = vrot.slane %v401_v58, 1  ;;  %v809_v4 = vrot.slane %v808_v59, 4  ;;  %v412_v5 = vrot.slane %v411_v60, 4 }
 0x12d   :  { %v396_v37 = vadd.f32 %v395_v38, %v394_v55  ;;  %v806_v6 = vrot.slane %v805_v61, 1  ;;  %v406_v30 = vadd.f32 %v405_v26, %v404_v3  ;;  %v816_v7 = vrot.slane %v815_v62, 4 }
 0x12e   :  { %v800_v8 = vadd.f32 %v799_v63, %v798_v57  ;;  %v403_v9 = vadd.f32 %v402_v0, %v401_v58  ;;  %v810_v10 = vadd.f32 %v809_v4, %v808_v59  ;;  %v413_v21 = vadd.f32 %v412_v5, %v411_v60 }
 0x12f   :  { %v807_v20 = vadd.f32 %v806_v6, %v805_v61  ;;  %v407_v11 = vrot.slane %v406_v30, 2  ;;  %v817_v13 = vadd.f32 %v816_v7, %v815_v62  ;;  %v427_v14 = vsel %vm426_vm1, %v1199_v12, %v1183_v36 }
 0x130   :  { %v811_v15 = vrot.slane %v810_v10, 2  ;;  %v414_v17 = vrot.slane %v413_v21, 2  ;;  %v429_v18 = vsel %vm428_vm2, %v396_v37, %v427_v14  ;;  %v432_v24 = vsel %vm426_vm1, %v1201_v19, %v1185_v42 }
 0x131   :  { %v408_v25 = vadd.f32 %v407_v11, %v406_v30  ;;  %v818_v27 = vrot.slane %v817_v13, 2  ;;  %v433_v28 = vsel %vm428_vm2, %v403_v9, %v432_v24  ;;  %v831_v29 = vsel %vm830_vm3, %v786_v1, %v1188_v52 }
 0x132   :  { %v812_v31 = vadd.f32 %v811_v15, %v810_v10  ;;  %v415_v32 = vadd.f32 %v414_v17, %v413_v21  ;;  %v833_v33 = vsel %vm832_vm4, %v800_v8, %v831_v29  ;;  %v836_v36 = vsel %vm830_vm3, %v793_v41, %v1191_v56 }
 0x133   :  { %v409_v12 = vrot.slane %v408_v25, 1  ;;  %v819_v35 = vadd.f32 %v818_v27, %v817_v13  ;;  %v837_v22 = vsel %vm832_vm4, %v807_v20, %v836_v36 }
 0x134   :  { %v813_v39 = vrot.slane %v812_v31, 1  ;;  %v416_v42 = vrot.slane %v415_v32, 1 }
 0x135   :  { %v410_v19 = vadd.f32 %v409_v12, %v408_v25  ;;  %v820_v40 = vrot.slane %v819_v35, 1 }
 0x136   :  { %v814_v52 = vadd.f32 %v813_v39, %v812_v31  ;;  %v417_v1 = vadd.f32 %v416_v42, %v415_v32 }
 0x137   :  { %v821_v43 = vadd.f32 %v820_v40, %v819_v35  ;;  %v431_v44 = vsel %vm430_vm5, %v410_v19, %v429_v18 }
 0x138   :  { %v434_v45 = vsel %vm430_vm5, %v417_v1, %v433_v28  ;;  %437 = vst [vmem:[#allocation5] sm:$0xf] %v431_v44  ;;  %v835_v46 = vsel %vm834_vm6, %v814_v52, %v833_v33 }
 0x139   :  { %438 = vst [vmem:[#allocation5 + $0x8] sm:$0xf] %v434_v45  ;;  %v838_v56 = vsel %vm834_vm6, %v821_v43, %v837_v22  ;;  %841 = vst [vmem:[#allocation5] sm:$0xf0] %v835_v46 }
 0x13a   :  { %842 = vst [vmem:[#allocation5 + $0x8] sm:$0xf0] %v838_v56 }
 0x13b   :  { %920 = shalt.err (!%p917_p9)
}
 0x13c   :  { %s921_s15 = scalar_lea.hbm %s1240_s3, 256 }
 0x13d   :  { %p922_p10 = scmp.ne.s32.totalorder %s1240_s3, %s921_s15  ;;  %p925_p11 = scmp.lt.u32.totalorder %s921_s15, %s1240_s3 }
 0x13f   :  { %p927_p12 = pnand %p925_p11, %p922_p10 }
 0x141   :  { %930 = shalt.err (!%p927_p12)
}
 0x142   :  { %852 = dma.vmem_to_hbm [thread:$0]  %s850_s11, 256, %s1240_s3, [#allocation3]  }
 0x143   :  { %933 = dma.done.wait [#allocation3], 256  }
 0x144   :  { %934 = vsyncadd [#allocation3], 4294967040 }
 0x145   :  { %856 = vsyncpa [#allocation3], 1 }
 0x146   :  { %857 = vsyncpa [#allocation4], 1 }

</bundles_post_ra>
